<compile_context>
chip_gen: v7x
topology: tpu7x:2x2x1
jax: 0.10.0
libtpu: 0.0.40
codegen_flags: <defaults>
</compile_context>

<pallas_src>
import functools

import jax
import jax.numpy as jnp
from jax.experimental import pallas as pl
from jax.experimental.pallas import tpu as pltpu


def _round_up(a, m):
    return (a + m - 1) // m * m


def _stagnn_kernel(col_ref, ef_ref, xu_ref,
                   w1_ref, b1_ref, w2xu_ref, w2h_ref, b2_ref,
                   out_ref, acc_ref, cnt_ref, *, tile_n, tile_e):
    i = pl.program_id(0)          # N-tile index  (parallel)
    k = pl.program_id(1)          # E-tile index  (arbitrary / reduction)

    @pl.when(k == 0)
    def _init():
        acc_ref[...] = jnp.zeros_like(acc_ref)
        cnt_ref[...] = jnp.zeros_like(cnt_ref)

    # node_mlp_1 on this E-tile: h = relu(edge_feat @ W1 + b1)  -> (TE, gnn_pad)
    h = jnp.dot(ef_ref[...], w1_ref[...],
                preferred_element_type=jnp.float32) + b1_ref[...]
    h = jnp.maximum(h, 0.0)

    # Scatter-sum via an in-kernel 0/1 mask (no materialized [N, E] matrix):
    # mask[n, e] = (col[e] == global_node_id(n)).  Padded edges carry col=-1
    # and never match, so they contribute nothing (to the sum or the count).
    node_ids = i * tile_n + jax.lax.broadcasted_iota(
        jnp.int32, (tile_n, tile_e), 0)
    mask = (col_ref[...] == node_ids).astype(jnp.float32)       # (TN, TE)
    acc_ref[...] += jnp.dot(mask, h, preferred_element_type=jnp.float32)
    # Per-node incoming-edge count (scatter_mean denominator), XLU row-reduce.
    cnt_ref[...] += jnp.sum(mask, axis=1, keepdims=True)         # (TN, 1)

    # Finalize once per N-tile: mean, node_mlp_2, ReLU, lane-dense store.
    @pl.when(k == pl.num_programs(1) - 1)
    def _finalize():
        agg = acc_ref[...] / jnp.maximum(cnt_ref[...], 1.0)      # scatter_mean
        z = (jnp.dot(xu_ref[...], w2xu_ref[...],
                     preferred_element_type=jnp.float32)         # [x, u] branch
             + jnp.dot(agg, w2h_ref[...],
                       preferred_element_type=jnp.float32)       # agg branch
             + b2_ref[...])
        out_ref[...] = jnp.maximum(z, 0.0)


def stagnn_forward(x, edge_index, edge_attr, u, sta_num, params,
                   *, tile_n=256, tile_e=512):
    """Wrapper reproducing StaGNN.forward semantics."""
    N, node_h = x.shape
    E, edge_h = edge_attr.shape
    gnn_h = params["b1"].shape[-1]
    u_h = u.shape[-1]
    f1 = 2 * node_h + edge_h

    # u = u.reshape(-1, u_h); u = u.repeat(sta_num, 1)
    u_rep = jnp.tile(u.reshape(-1, u_h), (sta_num, 1))           # (N, u_h)

    row = edge_index[0].astype(jnp.int32)
    col = edge_index[1].astype(jnp.int32)

    # Edge gather + concat (glue; see TODO above).
    edge_feat = jnp.concatenate([x[row], x[col], edge_attr], axis=1)  # (E, f1)

    # ---- tiling / padding ---------------------------------------------------
    gnn_pad = _round_up(gnn_h, 128)                 # lane-dense output width
    tn = min(tile_n, _round_up(N, 8))
    te = min(tile_e, _round_up(E, 128))
    n_pad = _round_up(N, tn)
    e_pad = _round_up(E, te)

    edge_feat_p = jnp.zeros((e_pad, f1), jnp.float32).at[:E].set(edge_feat)
    col_p = jnp.full((1, e_pad), -1, jnp.int32).at[0, :E].set(col)

    xu = jnp.concatenate([x, u_rep], axis=1)                     # (N, node_h+u_h)
    xu_p = jnp.zeros((n_pad, node_h + u_h), jnp.float32).at[:N].set(xu)

    # Pad weights to the lane-dense gnn_pad width (extra cols/rows are zero,
    # so padded output columns are exactly relu(0) = 0 and are sliced off).
    w1_p = jnp.zeros((f1, gnn_pad), jnp.float32).at[:, :gnn_h].set(params["w1"])
    b1_p = jnp.zeros((1, gnn_pad), jnp.float32).at[:, :gnn_h].set(params["b1"])

    w2 = params["w2"]                                            # (node_h+gnn_h+u_h, gnn_h)
    w2x = w2[:node_h]
    w2h = w2[node_h:node_h + gnn_h]
    w2u = w2[node_h + gnn_h:]
    w2xu = jnp.concatenate([w2x, w2u], axis=0)                   # (node_h+u_h, gnn_h)
    w2xu_p = jnp.zeros((node_h + u_h, gnn_pad),
                       jnp.float32).at[:, :gnn_h].set(w2xu)
    w2h_p = jnp.zeros((gnn_pad, gnn_pad),
                      jnp.float32).at[:gnn_h, :gnn_h].set(w2h)
    b2_p = jnp.zeros((1, gnn_pad), jnp.float32).at[:, :gnn_h].set(params["b2"])

    grid = (n_pad // tn, e_pad // te)

    kernel = functools.partial(_stagnn_kernel, tile_n=tn, tile_e=te)

    grid_spec = pltpu.PrefetchScalarGridSpec(
        num_scalar_prefetch=0,
        grid=grid,
        in_specs=[
            pl.BlockSpec((1, te), lambda i, k: (0, k)),                  # col
            pl.BlockSpec((te, f1), lambda i, k: (k, 0)),                 # edge_feat
            pl.BlockSpec((tn, node_h + u_h), lambda i, k: (i, 0)),       # [x, u]
            pl.BlockSpec((f1, gnn_pad), lambda i, k: (0, 0)),            # W1
            pl.BlockSpec((1, gnn_pad), lambda i, k: (0, 0)),             # b1
            pl.BlockSpec((node_h + u_h, gnn_pad), lambda i, k: (0, 0)),  # W2[x,u]
            pl.BlockSpec((gnn_pad, gnn_pad), lambda i, k: (0, 0)),       # W2[agg]
            pl.BlockSpec((1, gnn_pad), lambda i, k: (0, 0)),             # b2
        ],
        out_specs=pl.BlockSpec((tn, gnn_pad), lambda i, k: (i, 0)),
        scratch_shapes=[
            pltpu.VMEM((tn, gnn_pad), jnp.float32),   # scatter-sum accumulator
            pltpu.VMEM((tn, 1), jnp.float32),         # per-node edge count
        ],
    )

    out_p = pl.pallas_call(
        kernel,
        out_shape=jax.ShapeDtypeStruct((n_pad, gnn_pad), jnp.float32),
        grid_spec=grid_spec,
        compiler_params=pltpu.CompilerParams(
            dimension_semantics=("parallel", "arbitrary"),
            vmem_limit_bytes=32 * 1024 * 1024,
        ),
    )(col_p, edge_feat_p, xu_p, w1_p, b1_p, w2xu_p, w2h_p, b2_p)

    return out_p[:N, :gnn_h]


def init_params(key, node_h, edge_h, gnn_h, u_h):
    k1, k2, k3, k4 = jax.random.split(key, 4)
    f1 = 2 * node_h + edge_h
    f2 = node_h + gnn_h + u_h
    # Linear stored as (in, out); y = x @ W + b  (== PyTorch x @ W.T + b)
    return {
        "w1": jax.random.normal(k1, (f1, gnn_h), jnp.float32) * 0.1,
        "b1": jax.random.normal(k2, (1, gnn_h), jnp.float32) * 0.1,
        "w2": jax.random.normal(k3, (f2, gnn_h), jnp.float32) * 0.1,
        "b2": jax.random.normal(k4, (1, gnn_h), jnp.float32) * 0.1,
    }


def stagnn_reference(x, edge_index, edge_attr, u, sta_num, params):
    """Pure-JAX reference for correctness check."""
    N, node_h = x.shape
    u_h = u.shape[-1]
    u_rep = jnp.tile(u.reshape(-1, u_h), (sta_num, 1))
    row, col = edge_index[0], edge_index[1]
    ef = jnp.concatenate([x[row], x[col], edge_attr], axis=1)
    h = jnp.maximum(ef @ params["w1"] + params["b1"], 0.0)
    gnn_h = h.shape[-1]
    summed = jnp.zeros((N, gnn_h), jnp.float32).at[col].add(h)
    cnt = jnp.zeros((N,), jnp.float32).at[col].add(1.0)
    agg = summed / jnp.maximum(cnt, 1.0)[:, None]
    z = jnp.concatenate([x, agg, u_rep], axis=1) @ params["w2"] + params["b2"]
    return jnp.maximum(z, 0.0)


if __name__ == "__main__":
    key = jax.random.PRNGKey(0)
    kx, ke, ku, ki, kp = jax.random.split(key, 5)

    node_h, edge_h, gnn_h, u_h = 8, 8, 32, 8
    B, sta_num = 2, 8
    N = B * sta_num          # 16 nodes
    E = 200                  # 200 edges

    x = jax.random.normal(kx, (N, node_h), jnp.float32)
    edge_attr = jax.random.normal(ke, (E, edge_h), jnp.float32)
    u = jax.random.normal(ku, (B, u_h), jnp.float32)
    edge_index = jax.random.randint(ki, (2, E), 0, N, dtype=jnp.int32)

    params = init_params(kp, node_h, edge_h, gnn_h, u_h)

    # Small tiles so the test exercises a real grid: 2 N-tiles x 2 E-steps
    # (production defaults are tile_n=256, tile_e=512).
    out = stagnn_forward(x, edge_index, edge_attr, u, sta_num, params,
                         tile_n=8, tile_e=128)
    out = jax.block_until_ready(out)

    ref = stagnn_reference(x, edge_index, edge_attr, u, sta_num, params)
    assert out.shape == (N, gnn_h)
    assert jnp.allclose(out, ref, atol=1e-4, rtol=1e-4)

    print("KERNEL_OK")
</pallas_src>

<mosaic_0001>
module attributes {stable_mosaic.version = 11 : i64} {
  func.func @_stagnn_kernel(%arg0: i32, %arg1: i32, %arg2: memref<1x128xi32, #tpu.memory_space<vmem>>, %arg3: memref<128x24xf32, #tpu.memory_space<vmem>>, %arg4: memref<8x16xf32, #tpu.memory_space<vmem>>, %arg5: memref<24x128xf32, #tpu.memory_space<vmem>>, %arg6: memref<1x128xf32, #tpu.memory_space<vmem>>, %arg7: memref<16x128xf32, #tpu.memory_space<vmem>>, %arg8: memref<128x128xf32, #tpu.memory_space<vmem>>, %arg9: memref<1x128xf32, #tpu.memory_space<vmem>>, %arg10: memref<8x128xf32, #tpu.memory_space<vmem>>, %arg11: memref<8x128xf32, #tpu.memory_space<vmem>>, %arg12: memref<8x1xf32, #tpu.memory_space<vmem>>) attributes {dimension_semantics = [#tpu.dimension_semantics<parallel>, #tpu.dimension_semantics<arbitrary>], iteration_bounds = array<i64: 2, 2>, scalar_prefetch = 0 : i64, scratch_operands = 2 : i64, tpu.core_type = #tpu.core_type<tc>, window_params = [{transform_indices = @transform_0, window_bounds = array<i64: 1, 128>}, {transform_indices = @transform_1, window_bounds = array<i64: 128, 24>}, {transform_indices = @transform_2, window_bounds = array<i64: 8, 16>}, {pipeline_mode = #tpu.pipeline_mode<synchronous>, transform_indices = @transform_3, window_bounds = array<i64: 24, 128>}, {pipeline_mode = #tpu.pipeline_mode<synchronous>, transform_indices = @transform_4, window_bounds = array<i64: 1, 128>}, {pipeline_mode = #tpu.pipeline_mode<synchronous>, transform_indices = @transform_5, window_bounds = array<i64: 16, 128>}, {pipeline_mode = #tpu.pipeline_mode<synchronous>, transform_indices = @transform_6, window_bounds = array<i64: 128, 128>}, {pipeline_mode = #tpu.pipeline_mode<synchronous>, transform_indices = @transform_7, window_bounds = array<i64: 1, 128>}, {transform_indices = @transform_8, window_bounds = array<i64: 8, 128>}]} {
    %c0_i32 = arith.constant 0 : i32
    %0 = arith.cmpi eq, %arg1, %c0_i32 : i32
    %1 = arith.extui %0 : i1 to i32
    %c0_i32_0 = arith.constant 0 : i32
    %2 = arith.cmpi ne, %1, %c0_i32_0 : i32
    scf.if %2 {
      %cst_20 = arith.constant 0.000000e+00 : f32
      %32 = vector.broadcast %cst_20 : f32 to vector<8x128xf32>
      %c0_21 = arith.constant 0 : index
      %c0_22 = arith.constant 0 : index
      %33 = vector.load %arg11[%c0_21, %c0_22] : memref<8x128xf32, #tpu.memory_space<vmem>>, vector<8x128xf32>
      tpu.vector_store %arg11[%c0_21, %c0_22], %32 {strides = array<i32>} : memref<8x128xf32, #tpu.memory_space<vmem>>, vector<8x128xf32>,
      %cst_23 = arith.constant 0.000000e+00 : f32
      %34 = vector.broadcast %cst_23 : f32 to vector<8x1xf32>
      %c0_24 = arith.constant 0 : index
      %c0_25 = arith.constant 0 : index
      %35 = vector.load %arg12[%c0_24, %c0_25] : memref<8x1xf32, #tpu.memory_space<vmem>>, vector<8x1xf32>
      tpu.vector_store %arg12[%c0_24, %c0_25], %34 {strides = array<i32>} : memref<8x1xf32, #tpu.memory_space<vmem>>, vector<8x1xf32>,
    } else {
    }
    %c0 = arith.constant 0 : index
    %c0_1 = arith.constant 0 : index
    %3 = vector.load %arg3[%c0, %c0_1] : memref<128x24xf32, #tpu.memory_space<vmem>>, vector<128x24xf32>
    %c0_2 = arith.constant 0 : index
    %c0_3 = arith.constant 0 : index
    %4 = vector.load %arg5[%c0_2, %c0_3] : memref<24x128xf32, #tpu.memory_space<vmem>>, vector<24x128xf32>
    %cst = arith.constant dense<0.000000e+00> : vector<128x128xf32>
    %5 = tpu.matmul %3, %4, %cst {dimension_numbers = #tpu.dot_dimension_numbers<[1], [0], [0], [1], [0, 0, 1, 1], [], []>} : vector<128x24xf32>, vector<24x128xf32>, vector<128x128xf32> -> vector<128x128xf32>
    %c0_4 = arith.constant 0 : index
    %c0_5 = arith.constant 0 : index
    %6 = vector.load %arg6[%c0_4, %c0_5] : memref<1x128xf32, #tpu.memory_space<vmem>>, vector<1x128xf32>
    %7 = vector.broadcast %6 : vector<1x128xf32> to vector<128x128xf32>
    %8 = arith.addf %5, %7 : vector<128x128xf32>
    %cst_6 = arith.constant 0.000000e+00 : f32
    %9 = vector.broadcast %cst_6 : f32 to vector<128x128xf32>
    %10 = arith.maximumf %8, %9 : vector<128x128xf32>
    %c8_i32 = arith.constant 8 : i32
    %11 = arith.muli %arg0, %c8_i32 : i32
    %12 = tpu.iota {dimensions = array<i32: 0>} : vector<8x128xi32>
    %13 = vector.broadcast %11 : i32 to vector<8x128xi32>
    %14 = arith.addi %13, %12 : vector<8x128xi32>
    %c0_7 = arith.constant 0 : index
    %c0_8 = arith.constant 0 : index
    %15 = vector.load %arg2[%c0_7, %c0_8] : memref<1x128xi32, #tpu.memory_space<vmem>>, vector<1x128xi32>
    %16 = vector.broadcast %15 : vector<1x128xi32> to vector<8x128xi32>
    %17 = arith.cmpi eq, %16, %14 : vector<8x128xi32>
    %18 = arith.extui %17 : vector<8x128xi1> to vector<8x128xi32>
    %19 = arith.sitofp %18 : vector<8x128xi32> to vector<8x128xf32>
    %c0_9 = arith.constant 0 : index
    %c0_10 = arith.constant 0 : index
    %20 = vector.load %arg11[%c0_9, %c0_10] : memref<8x128xf32, #tpu.memory_space<vmem>>, vector<8x128xf32>
    %cst_11 = arith.constant dense<0.000000e+00> : vector<8x128xf32>
    %21 = tpu.matmul %19, %10, %cst_11 {dimension_numbers = #tpu.dot_dimension_numbers<[1], [0], [0], [1], [0, 0, 1, 1], [], []>} : vector<8x128xf32>, vector<128x128xf32>, vector<8x128xf32> -> vector<8x128xf32>
    %22 = arith.addf %20, %21 : vector<8x128xf32>
    %c0_12 = arith.constant 0 : index
    %c0_13 = arith.constant 0 : index
    %23 = vector.load %arg11[%c0_12, %c0_13] : memref<8x128xf32, #tpu.memory_space<vmem>>, vector<8x128xf32>
    tpu.vector_store %arg11[%c0_12, %c0_13], %22 {strides = array<i32>} : memref<8x128xf32, #tpu.memory_space<vmem>>, vector<8x128xf32>,
    %c0_14 = arith.constant 0 : index
    %c0_15 = arith.constant 0 : index
    %24 = vector.load %arg12[%c0_14, %c0_15] : memref<8x1xf32, #tpu.memory_space<vmem>>, vector<8x1xf32>
    %cst_16 = arith.constant dense<0.000000e+00> : vector<8xf32>
    %25 = vector.multi_reduction <add>, %19, %cst_16 [1] : vector<8x128xf32> to vector<8xf32>
    %26 = vector.shape_cast %25 : vector<8xf32> to vector<8x1xf32>
    %27 = arith.addf %24, %26 : vector<8x1xf32>
    %c0_17 = arith.constant 0 : index
    %c0_18 = arith.constant 0 : index
    %28 = vector.load %arg12[%c0_17, %c0_18] : memref<8x1xf32, #tpu.memory_space<vmem>>, vector<8x1xf32>
    tpu.vector_store %arg12[%c0_17, %c0_18], %27 {strides = array<i32>} : memref<8x1xf32, #tpu.memory_space<vmem>>, vector<8x1xf32>,
    %c1_i32 = arith.constant 1 : i32
    %29 = arith.cmpi eq, %arg1, %c1_i32 : i32
    %30 = arith.extui %29 : i1 to i32
    %c0_i32_19 = arith.constant 0 : i32
    %31 = arith.cmpi ne, %30, %c0_i32_19 : i32
    scf.if %31 {
      %c0_20 = arith.constant 0 : index
      %c0_21 = arith.constant 0 : index
      %32 = vector.load %arg11[%c0_20, %c0_21] : memref<8x128xf32, #tpu.memory_space<vmem>>, vector<8x128xf32>
      %c0_22 = arith.constant 0 : index
      %c0_23 = arith.constant 0 : index
      %33 = vector.load %arg12[%c0_22, %c0_23] : memref<8x1xf32, #tpu.memory_space<vmem>>, vector<8x1xf32>
      %cst_24 = arith.constant 1.000000e+00 : f32
      %34 = vector.broadcast %cst_24 : f32 to vector<8x1xf32>
      %35 = arith.maximumf %33, %34 : vector<8x1xf32>
      %36 = vector.broadcast %35 : vector<8x1xf32> to vector<8x128xf32>
      %37 = arith.divf %32, %36 : vector<8x128xf32>
      %c0_25 = arith.constant 0 : index
      %c0_26 = arith.constant 0 : index
      %38 = vector.load %arg4[%c0_25, %c0_26] : memref<8x16xf32, #tpu.memory_space<vmem>>, vector<8x16xf32>
      %c0_27 = arith.constant 0 : index
      %c0_28 = arith.constant 0 : index
      %39 = vector.load %arg7[%c0_27, %c0_28] : memref<16x128xf32, #tpu.memory_space<vmem>>, vector<16x128xf32>
      %cst_29 = arith.constant dense<0.000000e+00> : vector<8x128xf32>
      %40 = tpu.matmul %38, %39, %cst_29 {dimension_numbers = #tpu.dot_dimension_numbers<[1], [0], [0], [1], [0, 0, 1, 1], [], []>} : vector<8x16xf32>, vector<16x128xf32>, vector<8x128xf32> -> vector<8x128xf32>
      %c0_30 = arith.constant 0 : index
      %c0_31 = arith.constant 0 : index
      %41 = vector.load %arg8[%c0_30, %c0_31] : memref<128x128xf32, #tpu.memory_space<vmem>>, vector<128x128xf32>
      %cst_32 = arith.constant dense<0.000000e+00> : vector<8x128xf32>
      %42 = tpu.matmul %37, %41, %cst_32 {dimension_numbers = #tpu.dot_dimension_numbers<[1], [0], [0], [1], [0, 0, 1, 1], [], []>} : vector<8x128xf32>, vector<128x128xf32>, vector<8x128xf32> -> vector<8x128xf32>
      %43 = arith.addf %40, %42 : vector<8x128xf32>
      %c0_33 = arith.constant 0 : index
      %c0_34 = arith.constant 0 : index
      %44 = vector.load %arg9[%c0_33, %c0_34] : memref<1x128xf32, #tpu.memory_space<vmem>>, vector<1x128xf32>
      %45 = vector.broadcast %44 : vector<1x128xf32> to vector<8x128xf32>
      %46 = arith.addf %43, %45 : vector<8x128xf32>
      %cst_35 = arith.constant 0.000000e+00 : f32
      %47 = vector.broadcast %cst_35 : f32 to vector<8x128xf32>
      %48 = arith.maximumf %46, %47 : vector<8x128xf32>
      %c0_36 = arith.constant 0 : index
      %c0_37 = arith.constant 0 : index
      %49 = vector.load %arg10[%c0_36, %c0_37] : memref<8x128xf32, #tpu.memory_space<vmem>>, vector<8x128xf32>
      tpu.vector_store %arg10[%c0_36, %c0_37], %48 {strides = array<i32>} : memref<8x128xf32, #tpu.memory_space<vmem>>, vector<8x128xf32>,
    } else {
    }
    return
  }
  func.func @transform_0(%arg0: i32, %arg1: i32) -> (i32, i32) {
    %c0_i32 = arith.constant 0 : i32
    %c0_i32_0 = arith.constant 0 : i32
    return %c0_i32, %arg1 : i32, i32
  }
  func.func @transform_1(%arg0: i32, %arg1: i32) -> (i32, i32) {
    %c0_i32 = arith.constant 0 : i32
    %c0_i32_0 = arith.constant 0 : i32
    return %arg1, %c0_i32 : i32, i32
  }
  func.func @transform_2(%arg0: i32, %arg1: i32) -> (i32, i32) {
    %c0_i32 = arith.constant 0 : i32
    %c0_i32_0 = arith.constant 0 : i32
    return %arg0, %c0_i32 : i32, i32
  }
  func.func @transform_3(%arg0: i32, %arg1: i32) -> (i32, i32) {
    %c0_i32 = arith.constant 0 : i32
    %c0_i32_0 = arith.constant 0 : i32
    %c0_i32_1 = arith.constant 0 : i32
    return %c0_i32, %c0_i32_0 : i32, i32
  }
  func.func @transform_4(%arg0: i32, %arg1: i32) -> (i32, i32) {
    %c0_i32 = arith.constant 0 : i32
    %c0_i32_0 = arith.constant 0 : i32
    %c0_i32_1 = arith.constant 0 : i32
    return %c0_i32, %c0_i32_0 : i32, i32
  }
  func.func @transform_5(%arg0: i32, %arg1: i32) -> (i32, i32) {
    %c0_i32 = arith.constant 0 : i32
    %c0_i32_0 = arith.constant 0 : i32
    %c0_i32_1 = arith.constant 0 : i32
    return %c0_i32, %c0_i32_0 : i32, i32
  }
  func.func @transform_6(%arg0: i32, %arg1: i32) -> (i32, i32) {
    %c0_i32 = arith.constant 0 : i32
    %c0_i32_0 = arith.constant 0 : i32
    %c0_i32_1 = arith.constant 0 : i32
    return %c0_i32, %c0_i32_0 : i32, i32
  }
  func.func @transform_7(%arg0: i32, %arg1: i32) -> (i32, i32) {
    %c0_i32 = arith.constant 0 : i32
    %c0_i32_0 = arith.constant 0 : i32
    %c0_i32_1 = arith.constant 0 : i32
    return %c0_i32, %c0_i32_0 : i32, i32
  }
  func.func @transform_8(%arg0: i32, %arg1: i32) -> (i32, i32) {
    %c0_i32 = arith.constant 0 : i32
    %c0_i32_0 = arith.constant 0 : i32
    return %arg0, %c0_i32 : i32, i32
  }
}

</mosaic_0001>

<bundles_post_ra>
// kernel: tpu_custom_call.1
= control target key start
LH: loop header
LB: loop body
LE: loop exit
PB: predicated region body
PF: predicated region fallthrough
CT: control target
= control target key end

     0   :  { %13 = vsyncpa [#allocation5], 0  ;;  %s1767_s0 = inlined_call_operand.vmem [shape: s32[1,256], index: 0, kind: input, shape index: {}]   ;;  %s1768_s1 = inlined_call_operand.vmem [shape: f32[256,24], index: 1, kind: input, shape index: {}]   ;;  %s1769_s2 = inlined_call_operand.vmem [shape: f32[16,16], index: 2, kind: input, shape index: {}]   ;;  %s1770_s3 = inlined_call_operand.vmem [shape: f32[24,128], index: 3, kind: input, shape index: {}]   ;;  %s1771_s4 = inlined_call_operand.vmem [shape: f32[1,128], index: 4, kind: input, shape index: {}]   ;;  %s1772_s5 = inlined_call_operand.vmem [shape: f32[16,128], index: 5, kind: input, shape index: {}]   ;;  %s1773_s6 = inlined_call_operand.vmem [shape: f32[128,128], index: 6, kind: input, shape index: {}]   ;;  %s1774_s7 = inlined_call_operand.vmem [shape: f32[1,128], index: 7, kind: input, shape index: {}]   ;;  %s1775_s8 = inlined_call_operand.hbm [shape: f32[16,128], index: 8, kind: output, shape index: {}]  }
   0x1   :  { %15 = vsyncpa [#allocation5 + $0x1], 0  ;;  %s1466_s27 = smov 0   ;;  %s1468_s28 = smov 0  }
   0x2   :  { %s1470_s29 = smov 0   ;;  %s1472_s30 = smov 0  }
   0x3   :  { %s1474_s9 = smov 0   ;;  %s1476_s10 = smov 0  }
   0x4   :  { %s1478_s11 = smov 0   ;;  %s1480_s12 = smov 0  }
   0x5 LB: > { %1782 = sst [smem:[#allocation7_spill]] %s1389_s29  ;;  %s976_s13 = sadd.s32 4294967295, %s1409_s12   ;;  %s1409_s12 = sphi %s1480_s12, %s21_s12   ;;  %s1405_s11 = sphi %s1478_s11, %s1798_s11   ;;  %s1401_s10 = sphi %s1476_s10, %s1797_s10   ;;  %s1397_s9 = sphi %s1474_s9, %s1796_s9   ;;  %s1393_s30 = sphi %s1472_s30, %s1795_s30   ;;  %s1389_s29 = sphi %s1470_s29, %s1794_s29   ;;  %s1385_s28 = sphi %s1468_s28, %s1800_s28   ;;  %s1381_s27 = sphi %s1466_s27, %s1799_s27  }
   0x6   : > { %1783 = sst [smem:[#allocation8_spill]] %s1401_s10  ;;  %s977_s14 = sadd.s32 4294967294, %s1409_s12  }
   0x7   : > { %1784 = sst [smem:[#allocation9_spill]] %s1405_s11  ;;  %s30_s15 = sadd.s32 1, %s1401_s10 }
   0x8   : > { %p31_p0 = scmp.ge.s32.totalorder %s30_s15, 2  ;;  %s33_s16 = sadd.s32 1, %s1405_s11 }
   0x9   : > { %p233_p1 = scmp.ne.s32.totalorder %s1389_s29, %s1385_s28  ;;  %p234_p2 = scmp.eq.s32.totalorder %s976_s13, 3 }
   0xa   : > { %s1802_s15 = smov (%p31_p0, %s30_s15), 0  ;;  %s1804_s16 = smov (!%p31_p0, %s33_s16), %s1405_s11 }
   0xb   : > { %1785 = sst [smem:[#allocation10_spill]] %s1802_s15  ;;  %p1515_p3 = por %p234_p2, %p233_p1 }
   0xc   : > { %p239_p4 = scmp.ne.s32.totalorder %s1385_s28, %s1381_s27  ;;  %p35_p5 = scmp.ge.s32.totalorder %s1804_s16, 2 }
   0xd   : > { %p240_p6 = scmp.eq.s32.totalorder %s977_s14, 3  ;;  %p980_p7 = scmp.ge.s32.totalorder %s1409_s12, 1 }
   0xe   : > { %p295_p8 = scmp.lt.s32.totalorder %s1409_s12, 5  ;;  %s1806_s16 = smov (%p35_p5, %s1804_s16), 0 }
   0xf   : > { %1787 = sst [smem:[#allocation11_spill]] %s1806_s16  ;;  %p1525_p9 = por %p240_p6, %p239_p4 }
  0x10   : > { %p296_p10 = pnand %p980_p7, %p295_p8  ;;  %s220_s19 = ssub.s32 %s1405_s11, %s1806_s16 }
  0x11   : > { %s1788_s18 = scalar_select %p1525_p9, 1, 0 }
  0x12   : > { %s223_s20 = sadd.s32 1, %s1389_s29  ;;  %p221_p11 = scmp.eq.s32.totalorder %s220_s19, 0 }
  0x13   : > { %1789 = sst [smem:[#allocation12_spill]] %s1788_s18  ;;  %299 = sbr.rel (%p296_p10) target bundleno = 761 (0x2f9), region = 52 }
  0x14   : > { %s1533_s21 = scalar_select %p221_p11, %s1389_s29, %s223_s20  }
  0x15   : > { %s1777_s22 = sand.u32 (!%p296_p10), 1, %s1385_s28   ;;  %p336_p12 = scmp.lt.s32.totalorder (!%p296_p10), %s1393_s30, 1 }
  0x16   : > { %1790 = sst [smem:[#allocation13_spill]] %s1533_s21  ;;  %s1539_s23 = sshll.u32 (!%p296_p10), %s1777_s22, 3 }
  0x17   : > { %s982_s24 = sshll.u32 (!%p296_p10), %s1393_s30, 4  ;;  %p345_p0 = scmp.lt.s32.totalorder (!%p296_p10), %s1397_s9, 1 }
  0x18   : > { %p340_p13 = scmp.lt.s32.totalorder (!%p296_p10), %s982_s24, 31  ;;  %s335_s18 = scalar_lea.vmem (!%p296_p10), [#allocation4], %s1539_s23 }
  0x19   : > { %p985_p1 = scmp.ne.s32.totalorder (!%p296_p10), %s1393_s30, 0 }
  0x1a   : > { %s1543_s25 = scalar_select %p336_p12, %s1393_s30, 1 }
  0x1b   : > { %s1808_s24 = smov (!%p340_p13, %s982_s24), 31  ;;  %352 = sbr.rel (%p985_p1) target bundleno = 34 (0x22), region = 56 }
  0x1c   : > { %s338_s14 = scalar_lea.vmem %s1767_s0, %s1543_s25  ;;  %s983_s19 = sshll.u32 %s1808_s24, 3  ;;  %vm354_vm0 = vcmask (!%p985_p1), 7168   ;;  %v1411_v0 = vmov (!%p985_p1), 0.0  }
  0x1d   : > { %s1553_s15 = scalar_lea.vmem %s1768_s1, %s983_s19  ;;  %353 = vst [vmem:[#allocation2] sm:$0xff] (!%p985_p1), %v1411_v0  ;;  %355 = vst.msk [vmem:[#allocation3] sm:$0xff] (!%p985_p1), %vm354_vm0, %v1411_v0 }
  0x1e   : > { %s346_s22 = scalar_select %p345_p0, %s1397_s9, 1 }
  0x20   : > { %s984_s11 = sshll.u32 %s346_s22, 3 }
  0x21   : > { %s1559_s29 = scalar_lea.vmem %s1769_s2, %s984_s11 }
  0x22 PF: > { %v372_v1 = vld [vmem:[%s1770_s3] sm:$0xff]  ;;  %v373_v2 = vld [vmem:[%s1770_s3 + $0x8] sm:$0xff]  ;;  %vm382_vm1 = vcmask 195584   ;;  %v374_v5 = vld [vmem:[%s1770_s3 + $0x10] sm:$0xff]  ;;  %v1412_v21 = vmov 0.0|0.0   ;;  %v593_v22 = vlaneseq  ;;  %s1003_s26 = sshll.u32 %s1397_s9, 3 }
  0x23   : > { %v1177_v3 = vpack.c.bf16 %v373_v2, %v372_v1  ;;  %v356_v4 = vld [vmem:[%s1553_s15] sm:$0xff]  ;;  %v357_v6 = vld [vmem:[%s1553_s15 + $0x8] sm:$0xff]  ;;  %v358_v7 = vld [vmem:[%s1553_s15 + $0x10] sm:$0xff]  ;;  %1181 = vmatprep.subr.bf16.mxu1 %v1412_v21  ;;  %v595_v24 = vstv %s1003_s26  ;;  %vm1413_vm2 = vmmov 0   ;;  %v1414_v27 = vmov 0.0   ;;  %p1007_p2 = scmp.ne.s32.totalorder %s1393_s30, 1 }
  0x24   : > { %1076 = vmatprep.mubr.msk.f32.mxu0 %vm382_vm1, %v356_v4  ;;  %v359_v8 = vld [vmem:[%s1553_s15 + $0x18] sm:$0xff]  ;;  %v360_v9 = vld [vmem:[%s1553_s15 + $0x20] sm:$0xff]  ;;  %v361_v10 = vld [vmem:[%s1553_s15 + $0x28] sm:$0xff]  ;;  %v594_v23 = vshrl.u32 %v593_v22, 7  ;;  %1132 = vmatprep.mubr.msk.f32.mxu1 %vm1413_vm2, %v1414_v27  ;;  %vm682_vm4 = vcmask 7168   ;;  %vm1418_vm5 = vmmov (!%p1007_p2), 0  }
  0x25   : > { %1178 = vmatprep.subr.bf16.mxu0 %v1177_v3  ;;  %v362_v11 = vld [vmem:[%s1553_s15 + $0x30] sm:$0xff]  ;;  %v363_v12 = vld [vmem:[%s1553_s15 + $0x38] sm:$0xff]  ;;  %v364_v13 = vld [vmem:[%s1553_s15 + $0x40] sm:$0xff]  ;;  %vm787_vm6 = vcmask (!%p1007_p2), 130048  }
  0x26   : > { %1180 = vmatpush3.bf16.msra.mxu0 %v1177_v3  ;;  %v365_v14 = vld [vmem:[%s1553_s15 + $0x48] sm:$0xff]  ;;  %v366_v15 = vld [vmem:[%s1553_s15 + $0x50] sm:$0xff]  ;;  %v367_v16 = vld [vmem:[%s1553_s15 + $0x58] sm:$0xff]  ;;  %v1606_v25 = vadd.s32 %v595_v24, %v594_v23  ;;  %v1415_v23 = vmov 1.0  }
  0x27   : > { %1074 = vmatprep.subr.mxu0 %v374_v5  ;;  %v368_v17 = vld [vmem:[%s1553_s15 + $0x60] sm:$0xff]  ;;  %v369_v18 = vld [vmem:[%s1553_s15 + $0x68] sm:$0xff]  ;;  %v370_v19 = vld [vmem:[%s1553_s15 + $0x70] sm:$0xff] }
  0x28   : > { %v371_v20 = vld [vmem:[%s1553_s15 + $0x78] sm:$0xff]  ;;  %v1613_v26 = vld [vmem:[%s338_s14] ss:$0 sm:$0xff]  ;;  %v678_v24 = vld [vmem:[#allocation3] sm:$0xff] }
  0x29   : > { %vm602_vm3 = vcmp.eq.s32.totalorder %v1613_v26, %v1606_v25  ;;  %v1623_v29 = vld [vmem:[%s1771_s4] ss:$0 sm:$0xff]  ;;  %v702_v25 = vld [vmem:[%s1773_s6 + $0x8] sm:$0xff] (!%p1007_p2)  ;;  %v1416_v26 = vmov (!%p1007_p2), 0  }
  0x2a   : > { %1075 = vmatpush3.msra.mxu0 %v374_v5  ;;  %v1005_v28 = vsel %vm602_vm3, 1.0, %v1414_v27  ;;  %1312 = vset.pattern.permute.xlu0 (!%p1007_p2), %v1416_v26 }
  0x2b   : > { %1077 = vmatmul.mubr.msk.f32.vlgmr.msra.gmra.mrb[0].mxu0 %vm382_vm1, %v357_v6  ;;  %679 = vadd.xlane.f32.xlu0 %v1005_v28 }
  0x2c   : > { %1079 = vmatprep.mubr.msk.f32.mxu0 %vm382_vm1, %v358_v7 }
  0x2f   : > { %1080 = vmatmul.mubr.msk.f32.gmra.mrb[2].mxu0 %vm382_vm1, %v359_v8 }
  0x30   : > { %1082 = vmatprep.mubr.msk.f32.mxu0 %vm382_vm1, %v360_v9 }
  0x33   : > { %1083 = vmatmul.mubr.msk.f32.gmra.mrb[4].mxu0 %vm382_vm1, %v361_v10 }
  0x34   : > { %1085 = vmatprep.mubr.msk.f32.mxu0 %vm382_vm1, %v362_v11 }
  0x37   : > { %1086 = vmatmul.mubr.msk.f32.gmra.mrb[6].mxu0 %vm382_vm1, %v363_v12 }
  0x38   : > { %1088 = vmatprep.mubr.msk.f32.mxu0 %vm382_vm1, %v364_v13 }
  0x3b   : > { %1089 = vmatmul.mubr.msk.f32.gmra.mrb[8].mxu0 %vm382_vm1, %v365_v14 }
  0x3c   : > { %1091 = vmatprep.mubr.msk.f32.mxu0 %vm382_vm1, %v366_v15 }
  0x3f   : > { %1092 = vmatmul.mubr.msk.f32.gmra.mrb[10].mxu0 %vm382_vm1, %v367_v16 }
  0x40   : > { %1094 = vmatprep.mubr.msk.f32.mxu0 %vm382_vm1, %v368_v17 }
  0x43   : > { %1095 = vmatmul.mubr.msk.f32.gmra.mrb[12].mxu0 %vm382_vm1, %v369_v18 }
  0x44   : > { %1097 = vmatprep.mubr.msk.f32.mxu0 %vm382_vm1, %v370_v19 }
  0x47   : > { %1098 = vmatmul.mubr.msk.f32.gmra.mrb[14].mxu0 %vm382_vm1, %v371_v20 }
  0xb8   : > { %v680_v27 = vpop.xlane.xlu0 %679 }
  0xb9   : > { %v681_v28 = vadd.f32 %v680_v27, %v678_v24 }
  0xbb   : > { %683 = vst.msk [vmem:[#allocation3] sm:$0xff] %vm682_vm4, %v681_v28 }
  0xfe   : > { %v1078_v30 = vpop.f32.mrb[0].mxu0 }
  0xff   : > { %v503_v31 = vadd.f32 %v1078_v30, %v1623_v29  ;;  %v497_v32 = vpop.f32.mrb[1].mxu0  ;;  %v605_v30 = vld [vmem:[#allocation2] sm:$0xff] }
 0x100   : > { %v498_v33 = vadd.f32 %v1623_v29, %v497_v32 }
 0x101   : > { %v577_v34 = vmax.f32 %v503_v31, 0.0 }
 0x102   : > { %v576_v35 = vmax.f32 %v498_v33, 0.0  ;;  %v1081_v36 = vpop.f32.mrb[2].mxu0  ;;  %v701_v33 = vld [vmem:[%s1773_s6] sm:$0xff] (!%p1007_p2) }
 0x103   : > { %v513_v37 = vadd.f32 %v1081_v36, %v1623_v29  ;;  %v507_v38 = vpop.f32.mrb[3].mxu0  ;;  %v1206_v36 = vpack.c.bf16 (!%p1007_p2), %v702_v25, %v701_v33 }
 0x104   : > { %v508_v39 = vadd.f32 %v1623_v29, %v507_v38  ;;  %v1182_v40 = vpack.c.bf16 %v577_v34, %v576_v35  ;;  %v1417_v35 = vmov (!%p1007_p2), 0.0|0.0   ;;  %v704_v38 = vld [vmem:[%s1773_s6 + $0x18] sm:$0xff] (!%p1007_p2) }
 0x105   : > { %v579_v41 = vmax.f32 %v513_v37, 0.0  ;;  %1205 = vmatprep.subr.bf16.mxu0 (!%p1007_p2), %v1417_v35  ;;  %v703_v37 = vld [vmem:[%s1773_s6 + $0x10] sm:$0xff] (!%p1007_p2) }
 0x106   : > { %v578_v42 = vmax.f32 %v508_v39, 0.0  ;;  %v1084_v43 = vpop.f32.mrb[4].mxu0  ;;  %1183 = vmatpush3.bf16.msra.mxu1 %v1182_v40  ;;  %1207 = vmatpush3.bf16.msra.mxu0 (!%p1007_p2), %v1206_v36  ;;  %v1209_v39 = vpack.c.bf16 (!%p1007_p2), %v704_v38, %v703_v37  ;;  %v705_v40 = vld [vmem:[%s1773_s6 + $0x20] sm:$0xff] (!%p1007_p2) }
 0x107   : > { %v523_v44 = vadd.f32 %v1084_v43, %v1623_v29  ;;  %v517_v45 = vpop.f32.mrb[5].mxu0  ;;  %1184 = vmatprep.subr.bf16.mxu1 %v1412_v21  ;;  %1208 = vmatprep.subr.bf16.mxu0 (!%p1007_p2), %v1417_v35  ;;  %v699_v43 = vld [vmem:[%s1772_s5] sm:$0xff] (!%p1007_p2) }
 0x108   : > { %v1185_v46 = vpack.c.bf16 %v579_v41, %v578_v42  ;;  %v518_v47 = vadd.f32 %v1623_v29, %v517_v45  ;;  %v706_v41 = vld [vmem:[%s1773_s6 + $0x28] sm:$0xff] (!%p1007_p2)  ;;  %v1419_v42 = vmov (!%p1007_p2), 0.0  }
 0x109   : > { %v581_v48 = vmax.f32 %v523_v44, 0.0  ;;  %v700_v44 = vld [vmem:[%s1772_s5 + $0x8] sm:$0xff] (!%p1007_p2)  ;;  %1167 = vmatprep.mubr.msk.f32.mxu0 (!%p1007_p2), %vm1418_vm5, %v1419_v42 }
 0x10a   : > { %v580_v49 = vmax.f32 %v518_v47, 0.0  ;;  %v1087_v50 = vpop.f32.mrb[6].mxu0  ;;  %1186 = vmatpush3.bf16.msra.mxu1 %v1185_v46  ;;  %v1230_v45 = vpack.c.bf16 (!%p1007_p2), %v700_v44, %v699_v43  ;;  %1210 = vmatpush3.bf16.msra.mxu0 (!%p1007_p2), %v1209_v39  ;;  %v1212_v46 = vpack.c.bf16 (!%p1007_p2), %v706_v41, %v705_v40  ;;  %v707_v47 = vld [vmem:[%s1773_s6 + $0x30] sm:$0xff] (!%p1007_p2) }
 0x10b   : > { %v533_v51 = vadd.f32 %v1087_v50, %v1623_v29  ;;  %v527_v52 = vpop.f32.mrb[7].mxu0  ;;  %1187 = vmatprep.subr.bf16.mxu1 %v1412_v21  ;;  %1211 = vmatprep.subr.bf16.mxu0 (!%p1007_p2), %v1417_v35 }
 0x10c   : > { %v1188_v53 = vpack.c.bf16 %v581_v48, %v580_v49  ;;  %v528_v54 = vadd.f32 %v1623_v29, %v527_v52  ;;  %v708_v48 = vld [vmem:[%s1773_s6 + $0x38] sm:$0xff] (!%p1007_p2)  ;;  %v698_v49 = vld [vmem:[%s1559_s29] sm:$0xff] (!%p1007_p2)  ;;  %v710_v52 = vld [vmem:[%s1773_s6 + $0x48] sm:$0xff] (!%p1007_p2) }
 0x10d   : > { %v583_v55 = vmax.f32 %v533_v51, 0.0  ;;  %v1215_v50 = vpack.c.bf16 (!%p1007_p2), %v708_v48, %v707_v47  ;;  %v709_v51 = vld [vmem:[%s1773_s6 + $0x40] sm:$0xff] (!%p1007_p2) }
 0x10e   : > { %v582_v56 = vmax.f32 %v528_v54, 0.0  ;;  %v1090_v57 = vpop.f32.mrb[8].mxu0  ;;  %1189 = vmatpush3.bf16.msra.mxu1 %v1188_v53  ;;  %1213 = vmatpush3.bf16.msra.mxu0 (!%p1007_p2), %v1212_v46  ;;  %v1218_v53 = vpack.c.bf16 (!%p1007_p2), %v710_v52, %v709_v51  ;;  %v711_v54 = vld [vmem:[%s1773_s6 + $0x50] sm:$0xff] (!%p1007_p2) }
 0x10f   : > { %v543_v58 = vadd.f32 %v1090_v57, %v1623_v29  ;;  %v537_v59 = vpop.f32.mrb[9].mxu0  ;;  %1190 = vmatprep.subr.bf16.mxu1 %v1412_v21  ;;  %1214 = vmatprep.subr.bf16.mxu0 (!%p1007_p2), %v1417_v35  ;;  %v713_v57 = vld [vmem:[%s1773_s6 + $0x60] sm:$0xff] (!%p1007_p2) }
 0x110   : > { %v1191_v60 = vpack.c.bf16 %v583_v55, %v582_v56  ;;  %v538_v61 = vadd.f32 %v1623_v29, %v537_v59  ;;  %v712_v55 = vld [vmem:[%s1773_s6 + $0x58] sm:$0xff] (!%p1007_p2) }
 0x111   : > { %v585_v62 = vmax.f32 %v543_v58, 0.0  ;;  %v1221_v56 = vpack.c.bf16 (!%p1007_p2), %v712_v55, %v711_v54  ;;  %v714_v58 = vld [vmem:[%s1773_s6 + $0x68] sm:$0xff] (!%p1007_p2) }
 0x112   : > { %v584_v63 = vmax.f32 %v538_v61, 0.0  ;;  %v1093_v0 = vpop.f32.mrb[10].mxu0  ;;  %1192 = vmatpush3.bf16.msra.mxu1 %v1191_v60  ;;  %1216 = vmatpush3.bf16.msra.mxu0 (!%p1007_p2), %v1215_v50  ;;  %v1224_v59 = vpack.c.bf16 (!%p1007_p2), %v714_v58, %v713_v57  ;;  %v715_v60 = vld [vmem:[%s1773_s6 + $0x70] sm:$0xff] (!%p1007_p2)  ;;  %v716_v61 = vld [vmem:[%s1773_s6 + $0x78] sm:$0xff] (!%p1007_p2) }
 0x113   : > { %v553_v1 = vadd.f32 %v1093_v0, %v1623_v29  ;;  %v547_v2 = vpop.f32.mrb[11].mxu0  ;;  %1193 = vmatprep.subr.bf16.mxu1 %v1412_v21  ;;  %1217 = vmatprep.subr.bf16.mxu0 (!%p1007_p2), %v1417_v35 }
 0x114   : > { %v1194_v3 = vpack.c.bf16 %v585_v62, %v584_v63  ;;  %v548_v4 = vadd.f32 %v1623_v29, %v547_v2  ;;  %v1227_v62 = vpack.c.bf16 (!%p1007_p2), %v716_v61, %v715_v60 }
 0x115   : > { %v587_v5 = vmax.f32 %v553_v1, 0.0 }
 0x116   : > { %v586_v6 = vmax.f32 %v548_v4, 0.0  ;;  %v1096_v7 = vpop.f32.mrb[12].mxu0  ;;  %1195 = vmatpush3.bf16.msra.mxu1 %v1194_v3  ;;  %1219 = vmatpush3.bf16.msra.mxu0 (!%p1007_p2), %v1218_v53 }
 0x117   : > { %v563_v8 = vadd.f32 %v1096_v7, %v1623_v29  ;;  %v557_v9 = vpop.f32.mrb[13].mxu0  ;;  %1196 = vmatprep.subr.bf16.mxu1 %v1412_v21  ;;  %1220 = vmatprep.subr.bf16.mxu0 (!%p1007_p2), %v1417_v35 }
 0x118   : > { %v1197_v10 = vpack.c.bf16 %v587_v5, %v586_v6  ;;  %v558_v11 = vadd.f32 %v1623_v29, %v557_v9  ;;  %v1009_v6 = vld [vmem:[%s1774_s7] ss:$0 sm:$0xff] (!%p1007_p2) }
 0x119   : > { %v589_v12 = vmax.f32 %v563_v8, 0.0 }
 0x11a   : > { %v588_v13 = vmax.f32 %v558_v11, 0.0  ;;  %v1099_v14 = vpop.f32.mrb[14].mxu0  ;;  %1198 = vmatpush3.bf16.msra.mxu1 %v1197_v10  ;;  %1222 = vmatpush3.bf16.msra.mxu0 (!%p1007_p2), %v1221_v56 }
 0x11b   : > { %v573_v15 = vadd.f32 %v1099_v14, %v1623_v29  ;;  %v567_v16 = vpop.f32.mrb[15].mxu0  ;;  %1199 = vmatprep.subr.bf16.mxu1 %v1412_v21  ;;  %1223 = vmatprep.subr.bf16.mxu0 (!%p1007_p2), %v1417_v35 }
 0x11c   : > { %v1200_v17 = vpack.c.bf16 %v589_v12, %v588_v13  ;;  %v568_v18 = vadd.f32 %v1623_v29, %v567_v16 }
 0x11d   : > { %v591_v19 = vmax.f32 %v573_v15, 0.0 }
 0x11e   : > { %v590_v20 = vmax.f32 %v568_v18, 0.0  ;;  %1201 = vmatpush3.bf16.msra.mxu1 %v1200_v17  ;;  %1225 = vmatpush3.bf16.msra.mxu0 (!%p1007_p2), %v1224_v59 }
 0x11f   : > { %1202 = vmatprep.subr.bf16.mxu1 %v1412_v21  ;;  %v689_v21 = vld [vmem:[#allocation3] sm:$0xff] (!%p1007_p2)  ;;  %1226 = vmatprep.subr.bf16.mxu0 (!%p1007_p2), %v1417_v35 }
 0x120   : > { %v1203_v22 = vpack.c.bf16 %v591_v19, %v590_v20  ;;  %v690_v34 = vmax.f32 (!%p1007_p2), %v689_v21, 1.0 }
 0x122   : > { %1204 = vmatpush3.bf16.msra.mxu1 %v1203_v22  ;;  %693 = vperm.xlu0 (!%p1007_p2), %1312, %v690_v34  }
 0x123   : > { %1229 = vmatprep.subr.bf16.mxu1 (!%p1007_p2), %v1417_v35  ;;  %1228 = vmatpush3.bf16.msra.mxu0 (!%p1007_p2), %v1227_v62 }
 0x125   : > { %1133 = vmatmul.mubr.msk.f32.vlgmr.msra.gmra.mrb[0].mxu1 %vm602_vm3, %v1415_v23 }
 0x126   : > { %1174 = vmatprep.mubr.msk.f32.mxu1 (!%p1007_p2), %vm1418_vm5, %v1419_v42  ;;  %1231 = vmatpush3.bf16.msra.mxu1 (!%p1007_p2), %v1230_v45 }
 0x1a1   : > { %v694_v63 = vpop.permute.xlu0 (!%p1007_p2), %693 }
 0x1a2   : > { %1313 = vrcp.f32 (!%p1007_p2), %v694_v63 }
 0x1ac   : > { %v1314_v1 = vpop.eup (!%p1007_p2), %1313 }
 0x1f5   : > { %687 = sbr.rel (%p1007_p2) target bundleno = 736 (0x2e0), region = 60 }
 0x1f8   : > { %v672_v31 = vpop.f32.mrb[0].mxu1 }
 0x1f9   : > { %v676_v29 = vadd.f32 %v672_v31, %v605_v30  ;;  %v1134_v32 = vpop.f32.mrb[1].mxu1  ;;  %1175 = vmatmul.mubr.msk.f32.vlgmr.msra.gmra.mrb[0].mxu1 (!%p1007_p2), %vm787_vm6, %v698_v49 }
 0x1fb   : > { %677 = vst [vmem:[#allocation2] sm:$0xff] %v676_v29 }
 0x202   : > { %v688_v0 = vld [vmem:[#allocation2] sm:$0xff] }
 0x203   : > { %v697_v2 = vmul.f32 %v1314_v1, %v688_v0 }
 0x205   : > { %1168 = vmatmul.mubr.f32.vlgmr.msra.gmra.mrb[0].mxu0 %v697_v2 }
 0x2cc   : > { %v857_v3 = vpop.f32.mrb[0].mxu1 }
 0x2cd   : > { %v1176_v4 = vpop.f32.mrb[1].mxu1 }
 0x2d8   : > { %v783_v5 = vpop.f32.mrb[0].mxu0 }
 0x2d9   : > { %v858_v7 = vadd.f32 %v857_v3, %v783_v5  ;;  %v1169_v8 = vpop.f32.mrb[1].mxu0 }
 0x2db   : > { %v868_v9 = vadd.f32 %v1009_v6, %v858_v7 }
 0x2dd   : > { %v869_v10 = vmax.f32 %v868_v9, 0.0 }
 0x2df   : > { %870 = vst [vmem:[%s335_s18] sm:$0xff] %v869_v10 }
 0x2e0 PF: > { %s1011_s26 = sshll.u32 %s1397_s9, 7  ;;  %s885_s15 = sshll.u32 %s335_s18, 4  ;;  %s886_s15 = int_to_ptr.vmem [resolvable:$true] %s885_s15 }
 0x2e1   : > { %s1716_s29 = scalar_lea.hbm %s1775_s8, %s1011_s26  ;;  %s1791_s20 = sand.u32 1, %s1385_s28  }
 0x2e2   : > { %s872_s25 = scalar_lea.sflag [#allocation5], %s1791_s20  ;;  %s1315_s14 = scalar_lea.vmem %s886_s15, 128 }
 0x2e3   : > { %p1316_p4 = scmp.ne.s32.totalorder %s886_s15, %s1315_s14  ;;  %s1420_s24 = smov [#allocation4]  }
 0x2e4   : > { %s1319_s16 = sshll.u32 %s1420_s24, 4  ;;  %s1320_s16 = int_to_ptr.vmem [resolvable:$false] %s1319_s16 }
 0x2e5   : > { %p1317_p5 = pnand %p1316_p4, %p1515_p3  ;;  %s1321_s10 = scalar_lea.vmem %s1320_s16, 256 }
 0x2e6   : > { %p1322_p7 = scmp.lt.s32.totalorder %s886_s15, %s1320_s16  ;;  %p1323_p8 = scmp.lt.s32.totalorder %s1321_s10, %s1315_s14 }
 0x2e7   : > { %p1318_p6 = pneg %p1317_p5 }
 0x2e8   : > { %p1324_p10 = por %p1323_p8, %p1322_p7 }
 0x2ea   : > { %p1325_p11 = pnand %p1324_p10, %p1318_p6 }
 0x2ec   : > { %1328 = shalt.err (!%p1325_p11)
}
 0x2ed   : > { %s1329_s9 = scalar_lea.hbm %s1716_s29, 128  ;;  %s1333_s11 = scalar_lea.hbm %s1775_s8, 256 }
 0x2ee   : > { %p1330_p12 = scmp.ne.s32.totalorder %s1716_s29, %s1329_s9  ;;  %p1334_p1 = scmp.lt.u32.totalorder %s1716_s29, %s1775_s8 }
 0x2ef   : > { %p1335_p2 = scmp.lt.u32.totalorder %s1333_s11, %s1329_s9  ;;  %p1337_p5 = scmp.lt.u32.totalorder %s1329_s9, %s1716_s29 }
 0x2f0   : > { %p1331_p13 = pnand %p1330_p12, %p1515_p3 }
 0x2f1   : > { %p1336_p4 = por %p1335_p2, %p1334_p1 }
 0x2f2   : > { %p1332_p0 = pneg %p1331_p13 }
 0x2f3   : > { %p1338_p6 = por %p1337_p5, %p1336_p4 }
 0x2f5   : > { %p1339_p7 = pnand %p1338_p6, %p1332_p0 }
 0x2f7   : > { %1342 = shalt.err (!%p1339_p7)
}
 0x2f8   : > { %1232 = dma.vmem_to_hbm [thread:$0]  (%p1515_p3), %s886_s15, 128, %s1716_s29, %s872_s25  }
 0x2f9 PF: > { %p1238_p8 = scmp.ge.s32.totalorder %s1409_s12, 2  ;;  %s897_s26 = sand.u32 1, %s1381_s27  }
 0x2fa   : > { %s898_s13 = scalar_lea.sflag [#allocation5], %s897_s26 }
 0x2fb   : > { %p1235_p10 = pnand %p1238_p8, %p1525_p9 }
 0x2fd   : > { %1376 = dma.done.wait (!%p1235_p10), %s898_s13, 128  }
 0x2fe   : > { %1378 = vsyncadd (!%p1235_p10), %s898_s13, 4294967168  ;;  %s21_s12 = sadd.s32 1, %s1409_s12   ;;  %s1793_s19 = sld [smem:[#allocation7_spill]] }
 0x2ff   : > { %p18_p11 = scmp.ge.s32.totalorder %s21_s12, 6   ;;  %s1794_s29 = sld [smem:[#allocation13_spill]] }
 0x300   : > { %s1795_s30 = sld [smem:[#allocation8_spill]]  ;;  %s1796_s9 = sld [smem:[#allocation9_spill]] }
 0x301   : > { %s1797_s10 = sld [smem:[#allocation10_spill]]  ;;  %s1798_s11 = sld [smem:[#allocation11_spill]] }
 0x302   : > { %s1799_s27 = smov %s1385_s28  ;;  %20 = sbr.rel (!%p18_p11) target bundleno = 5 (0x5), region = 101 }
 0x304   : > { %s1800_s28 = smov %s1793_s19 }
 0x309   :  { %903 = vsyncpa [#allocation5], 1 }
 0x30a   :  { %905 = vsyncpa [#allocation5 + $0x1], 1 }

</bundles_post_ra>
